<compile_context>
chip_gen: v5e
topology: v5e:2x2
jax: 0.10.0
libtpu: 0.0.40
codegen_flags: <defaults>
</compile_context>

<pallas_src>
import functools

import jax
import jax.numpy as jnp
from jax.experimental import pallas as pl
from jax.experimental.pallas import tpu as pltpu


def normalize(A):
    """Symmetric normalization D^{-1/2}(A+I)D^{-1/2} (matches the PyTorch helper)."""
    N = A.shape[0]
    A = A + jnp.eye(N, dtype=A.dtype)
    d = A.sum(axis=1)
    D = jnp.diag(jnp.power(d, -0.5))
    return D @ A @ D


def _ceil_to(x, m):
    return ((x + m - 1) // m) * m


def _pad2(x, rows, cols):
    """Zero-pad a 2-D array up to (rows, cols)."""
    r, c = x.shape
    if r == rows and c == cols:
        return x
    return jnp.pad(x, ((0, rows - r), (0, cols - c)))


def gcn_kernel(a_ref, x_ref, w1_ref, b1_ref, w2_ref, b2_ref, w3_ref, b3_ref,
               out_ref, a_vmem, hw_vmem, u_vmem, *, tm, inv_n):
    """Grid axis 0 streams row tiles of A_hat (single HBM read of A).

    Per tile: layer 1 + the W2 projection (overlaps with the next tile's DMA),
    the tile is parked in VMEM scratch, and the column-sum for the folded
    mean-pool is accumulated in f32.  The last step runs the layer-2
    aggregation on the now fully resident A and the tiny layer-3 + pool.
    """
    i = pl.program_id(0)
    n_tiles = pl.num_programs(0)
    cdt = a_ref.dtype          # bf16 compute dtype for MXU inputs
    f32 = jnp.float32

    a_tile = a_ref[...]                                      # (tm, Np) bf16

    @pl.when(i == 0)
    def _init():
        u_vmem[...] = jnp.zeros_like(u_vmem)

    # ---- layer 1 on this row tile: relu((A_i @ X) @ W1 + b1), then @ W2 ----
    h = jnp.dot(a_tile, x_ref[...], preferred_element_type=f32)          # (tm, din_p)
    h = jnp.dot(h.astype(cdt), w1_ref[...], preferred_element_type=f32)
    h = jnp.maximum(h + b1_ref[...], 0.0)                                # f32 epilogue
    hw = jnp.dot(h.astype(cdt), w2_ref[...], preferred_element_type=f32)  # (tm, hid_p)

    row0 = pl.multiple_of(i * tm, tm)
    a_vmem[pl.ds(row0, tm), :] = a_tile                      # keep A resident for layer 2
    hw_vmem[pl.ds(row0, tm), :] = hw.astype(cdt)             # park H1 @ W2 (bf16)
    # column sums of A (for u = 1^T A / N), accumulated in f32
    u_vmem[...] += jnp.sum(a_tile.astype(f32), axis=0, keepdims=True)

    @pl.when(i == n_tiles - 1)
    def _finalize():
        # ---- layer 2: relu(A @ (H1 W2) + b2) on the fully resident A ----
        h2 = jnp.dot(a_vmem[...], hw_vmem[...], preferred_element_type=f32)  # (Np, hid_p)
        h2 = jnp.maximum(h2 + b2_ref[...], 0.0)
        # ---- layer 3 + global mean-pool folded into u (kept in f32) ----
        u = u_vmem[...] * inv_n                                              # (1, Np) f32
        uh = jnp.dot(u, h2, preferred_element_type=f32)                      # (1, hid_p)
        out = jnp.dot(uh, w3_ref[...].astype(f32), preferred_element_type=f32)
        out_ref[...] = out + b3_ref[...]


def gcn_forward(A_hat, X, params, *, compute_dtype=jnp.bfloat16):
    """params: dict with fc{1,2,3} weights (out,in) and biases (out,), PyTorch convention."""
    dim_in = params["w1"].shape[1]
    dim_hid = params["w2"].shape[0]
    dim_out = params["w3"].shape[0]

    X2d = X.reshape((-1, dim_in))
    N = X2d.shape[0]
    assert A_hat.shape == (N, N), "number of rows after reshape must equal A.shape[0]"

    LANE = 128
    Np = _ceil_to(N, LANE)          # node axis: lane-dense everywhere (and 16-sublane ok)
    din_p = _ceil_to(dim_in, LANE)
    hid_p = _ceil_to(dim_hid, LANE)
    dout_p = _ceil_to(dim_out, LANE)

    # Cast to the bf16 compute dtype BEFORE padding (halves pad-copy traffic),
    # then zero-pad.  Zero padding is exact: padded feature columns only see
    # zero weights / zero bias, and padded graph rows never reach the output
    # because their A columns (hence their u entries) are zero.
    A_p = _pad2(A_hat.astype(compute_dtype), Np, Np)
    X_p = _pad2(X2d.astype(compute_dtype), Np, din_p)
    w1 = _pad2(params["w1"].T.astype(compute_dtype), din_p, din_p)
    w2 = _pad2(params["w2"].T.astype(compute_dtype), din_p, hid_p)
    w3 = _pad2(params["w3"].T.astype(compute_dtype), hid_p, dout_p)
    b1 = _pad2(params["b1"].reshape(1, -1).astype(jnp.float32), 1, din_p)
    b2 = _pad2(params["b2"].reshape(1, -1).astype(jnp.float32), 1, hid_p)
    b3 = _pad2(params["b3"].reshape(1, -1).astype(jnp.float32), 1, dout_p)

    # Row-tile size for streaming A (Np is always a multiple of 128).
    if Np % 512 == 0:
        TM = 512
    elif Np % 256 == 0:
        TM = 256
    else:
        TM = 128
    n_tiles = Np // TM

    # VMEM budget: persistent A + H1W2 scratch, double-buffered A row tile,
    # resident inputs (x2 for pipeline buffers), f32 intermediates, margin.
    resident = (X_p.nbytes + w1.nbytes + w2.nbytes + w3.nbytes
                + b1.nbytes + b2.nbytes + b3.nbytes)
    needed = (Np * Np * 2 + Np * hid_p * 2 + Np * 4        # scratch
              + 2 * TM * Np * 2                            # A tile double-buffer
              + 2 * resident
              + 3 * TM * din_p * 4 + 2 * Np * hid_p * 4    # f32 intermediates
              + (4 << 20))
    # TODO(synk): raise the 64 MiB cap per generation (v5e/v6e have 128 MiB physical).
    vmem_limit = int(min(max(needed, 32 << 20), 64 << 20))

    flops = int(2 * Np * Np * din_p      # A @ X
                + 2 * Np * din_p * din_p  # @ W1
                + 2 * Np * din_p * hid_p  # @ W2
                + 2 * Np * Np * hid_p     # A @ (H1 W2)
                + Np * Np                 # column-sum for u
                + 2 * Np * hid_p          # u @ H2
                + 2 * hid_p * dout_p)     # @ W3
    bytes_accessed = int(A_p.nbytes + X_p.nbytes + w1.nbytes + w2.nbytes + w3.nbytes
                         + b1.nbytes + b2.nbytes + b3.nbytes + dout_p * 4)

    kernel = functools.partial(gcn_kernel, tm=TM, inv_n=1.0 / N)

    out = pl.pallas_call(
        kernel,
        out_shape=jax.ShapeDtypeStruct((1, dout_p), jnp.float32),
        grid=(n_tiles,),
        in_specs=[
            pl.BlockSpec((TM, Np), lambda i: (i, 0)),        # A row tile (streamed)
            pl.BlockSpec((Np, din_p), lambda i: (0, 0)),     # X
            pl.BlockSpec((din_p, din_p), lambda i: (0, 0)),  # W1
            pl.BlockSpec((1, din_p), lambda i: (0, 0)),      # b1
            pl.BlockSpec((din_p, hid_p), lambda i: (0, 0)),  # W2
            pl.BlockSpec((1, hid_p), lambda i: (0, 0)),      # b2
            pl.BlockSpec((hid_p, dout_p), lambda i: (0, 0)), # W3
            pl.BlockSpec((1, dout_p), lambda i: (0, 0)),     # b3
        ],
        out_specs=pl.BlockSpec((1, dout_p), lambda i: (0, 0)),
        scratch_shapes=[
            pltpu.VMEM((Np, Np), compute_dtype),     # resident copy of A
            pltpu.VMEM((Np, hid_p), compute_dtype),  # H1 @ W2
            pltpu.VMEM((1, Np), jnp.float32),        # column-sum accumulator for u
        ],
        compiler_params=pltpu.CompilerParams(
            dimension_semantics=("arbitrary",),
            vmem_limit_bytes=vmem_limit),
        cost_estimate=pl.CostEstimate(flops=flops, transcendentals=0,
                                      bytes_accessed=bytes_accessed),
    )(A_p, X_p, w1, b1, w2, b2, w3, b3)

    # Slice padding away; (1, dim_out) -> (1, dim_out, 1) to match avg_pool1d output.
    return out[:, :dim_out].reshape(1, dim_out, 1)


def _reference(A_hat, X, params):
    """Pure-JAX f32 reference matching the PyTorch module exactly."""
    dim_in = params["w1"].shape[1]
    h = X.reshape((-1, dim_in)).astype(jnp.float32)
    h = jnp.maximum(A_hat @ h @ params["w1"].T + params["b1"], 0.0)
    h = jnp.maximum(A_hat @ h @ params["w2"].T + params["b2"], 0.0)
    h = A_hat @ h @ params["w3"].T + params["b3"]
    return jnp.mean(h, axis=0).reshape(1, -1, 1)


if __name__ == "__main__":
    N = 8          # number of graph nodes (kernel_size for the final avg-pool)
    dim_in = 32
    dim_out = 16
    dim_hid = dim_in // 2

    key = jax.random.PRNGKey(0)
    k_adj, k_x, k1, k2, k3, k4, k5, k6 = jax.random.split(key, 8)

    # Deterministic synthetic symmetric adjacency (0/1, no self loops).
    raw = (jax.random.uniform(k_adj, (N, N)) > 0.5).astype(jnp.float32)
    A = jnp.triu(raw, 1)
    A = A + A.T
    A_hat = normalize(A)

    # Node features: (N, dim_in)
    X = jax.random.normal(k_x, (N, dim_in), dtype=jnp.float32)

    # Deterministic Linear parameters (PyTorch shape convention: (out, in)).
    params = {
        "w1": 0.1 * jax.random.normal(k1, (dim_in, dim_in), dtype=jnp.float32),
        "b1": 0.1 * jax.random.normal(k2, (dim_in,), dtype=jnp.float32),
        "w2": 0.1 * jax.random.normal(k3, (dim_hid, dim_in), dtype=jnp.float32),
        "b2": 0.1 * jax.random.normal(k4, (dim_hid,), dtype=jnp.float32),
        "w3": 0.1 * jax.random.normal(k5, (dim_out, dim_hid), dtype=jnp.float32),
        "b3": 0.1 * jax.random.normal(k6, (dim_out,), dtype=jnp.float32),
    }

    out = gcn_forward(A_hat, X, params)
    out = jax.block_until_ready(out)

    ref = _reference(A_hat, X, params)
    assert out.shape == (1, dim_out, 1), out.shape
    # bf16 MXU inputs with f32 accumulation -> relaxed (but tight for bf16) tolerance.
    assert jnp.allclose(out, ref, atol=2e-2, rtol=2e-2), "mismatch vs reference"

    print("KERNEL_OK")
</pallas_src>

<mosaic_0001>
module attributes {stable_mosaic.version = 11 : i64} {
  func.func @gcn_kernel(%arg0: i32, %arg1: memref<128x128xbf16, #tpu.memory_space<vmem>>, %arg2: memref<128x128xbf16, #tpu.memory_space<vmem>>, %arg3: memref<128x128xbf16, #tpu.memory_space<vmem>>, %arg4: memref<1x128xf32, #tpu.memory_space<vmem>>, %arg5: memref<128x128xbf16, #tpu.memory_space<vmem>>, %arg6: memref<1x128xf32, #tpu.memory_space<vmem>>, %arg7: memref<128x128xbf16, #tpu.memory_space<vmem>>, %arg8: memref<1x128xf32, #tpu.memory_space<vmem>>, %arg9: memref<1x128xf32, #tpu.memory_space<vmem>>, %arg10: memref<128x128xbf16, #tpu.memory_space<vmem>>, %arg11: memref<128x128xbf16, #tpu.memory_space<vmem>>, %arg12: memref<1x128xf32, #tpu.memory_space<vmem>>) attributes {dimension_semantics = [#tpu.dimension_semantics<arbitrary>], iteration_bounds = array<i64: 1>, scalar_prefetch = 0 : i64, scratch_operands = 3 : i64, tpu.core_type = #tpu.core_type<tc>, window_params = [{transform_indices = @transform_0, window_bounds = array<i64: 128, 128>}, {pipeline_mode = #tpu.pipeline_mode<synchronous>, transform_indices = @transform_1, window_bounds = array<i64: 128, 128>}, {pipeline_mode = #tpu.pipeline_mode<synchronous>, transform_indices = @transform_2, window_bounds = array<i64: 128, 128>}, {pipeline_mode = #tpu.pipeline_mode<synchronous>, transform_indices = @transform_3, window_bounds = array<i64: 1, 128>}, {pipeline_mode = #tpu.pipeline_mode<synchronous>, transform_indices = @transform_4, window_bounds = array<i64: 128, 128>}, {pipeline_mode = #tpu.pipeline_mode<synchronous>, transform_indices = @transform_5, window_bounds = array<i64: 1, 128>}, {pipeline_mode = #tpu.pipeline_mode<synchronous>, transform_indices = @transform_6, window_bounds = array<i64: 128, 128>}, {pipeline_mode = #tpu.pipeline_mode<synchronous>, transform_indices = @transform_7, window_bounds = array<i64: 1, 128>}, {pipeline_mode = #tpu.pipeline_mode<synchronous>, transform_indices = @transform_8, window_bounds = array<i64: 1, 128>}]} {
    %c0 = arith.constant 0 : index
    %c0_0 = arith.constant 0 : index
    %0 = vector.load %arg1[%c0, %c0_0] : memref<128x128xbf16, #tpu.memory_space<vmem>>, vector<128x128xbf16>
    %c0_i32 = arith.constant 0 : i32
    %1 = arith.cmpi eq, %arg0, %c0_i32 : i32
    %2 = arith.extui %1 : i1 to i32
    %c0_i32_1 = arith.constant 0 : i32
    %3 = arith.cmpi ne, %2, %c0_i32_1 : i32
    scf.if %3 {
      %cst_22 = arith.constant 0.000000e+00 : f32
      %33 = vector.broadcast %cst_22 : f32 to vector<1x128xf32>
      %c0_23 = arith.constant 0 : index
      %c0_24 = arith.constant 0 : index
      %34 = vector.load %arg12[%c0_23, %c0_24] : memref<1x128xf32, #tpu.memory_space<vmem>>, vector<1x128xf32>
      tpu.vector_store %arg12[%c0_23, %c0_24], %33 {strides = array<i32>} : memref<1x128xf32, #tpu.memory_space<vmem>>, vector<1x128xf32>,
    } else {
    }
    %c0_2 = arith.constant 0 : index
    %c0_3 = arith.constant 0 : index
    %4 = vector.load %arg2[%c0_2, %c0_3] : memref<128x128xbf16, #tpu.memory_space<vmem>>, vector<128x128xbf16>
    %cst = arith.constant dense<0.000000e+00> : vector<128x128xf32>
    %5 = tpu.matmul %0, %4, %cst {dimension_numbers = #tpu.dot_dimension_numbers<[1], [0], [0], [1], [0, 0, 1, 1], [], []>} : vector<128x128xbf16>, vector<128x128xbf16>, vector<128x128xf32> -> vector<128x128xf32>
    %6 = arith.truncf %5 : vector<128x128xf32> to vector<128x128xbf16>
    %c0_4 = arith.constant 0 : index
    %c0_5 = arith.constant 0 : index
    %7 = vector.load %arg3[%c0_4, %c0_5] : memref<128x128xbf16, #tpu.memory_space<vmem>>, vector<128x128xbf16>
    %cst_6 = arith.constant dense<0.000000e+00> : vector<128x128xf32>
    %8 = tpu.matmul %6, %7, %cst_6 {dimension_numbers = #tpu.dot_dimension_numbers<[1], [0], [0], [1], [0, 0, 1, 1], [], []>} : vector<128x128xbf16>, vector<128x128xbf16>, vector<128x128xf32> -> vector<128x128xf32>
    %c0_7 = arith.constant 0 : index
    %c0_8 = arith.constant 0 : index
    %9 = vector.load %arg4[%c0_7, %c0_8] : memref<1x128xf32, #tpu.memory_space<vmem>>, vector<1x128xf32>
    %10 = vector.broadcast %9 : vector<1x128xf32> to vector<128x128xf32>
    %11 = arith.addf %8, %10 : vector<128x128xf32>
    %cst_9 = arith.constant 0.000000e+00 : f32
    %12 = vector.broadcast %cst_9 : f32 to vector<128x128xf32>
    %13 = arith.maximumf %11, %12 : vector<128x128xf32>
    %14 = arith.truncf %13 : vector<128x128xf32> to vector<128x128xbf16>
    %c0_10 = arith.constant 0 : index
    %c0_11 = arith.constant 0 : index
    %15 = vector.load %arg5[%c0_10, %c0_11] : memref<128x128xbf16, #tpu.memory_space<vmem>>, vector<128x128xbf16>
    %cst_12 = arith.constant dense<0.000000e+00> : vector<128x128xf32>
    %16 = tpu.matmul %14, %15, %cst_12 {dimension_numbers = #tpu.dot_dimension_numbers<[1], [0], [0], [1], [0, 0, 1, 1], [], []>} : vector<128x128xbf16>, vector<128x128xbf16>, vector<128x128xf32> -> vector<128x128xf32>
    %c128_i32 = arith.constant 128 : i32
    %17 = arith.muli %arg0, %c128_i32 : i32
    %18 = tpu.assume_multiple %17, 128 : i32
    %19 = arith.index_cast %18 : i32 to index
    %c0_13 = arith.constant 0 : index
    %20 = vector.load %arg10[%19, %c0_13] : memref<128x128xbf16, #tpu.memory_space<vmem>>, vector<128x128xbf16>
    tpu.vector_store %arg10[%19, %c0_13], %0 {strides = array<i32>} : memref<128x128xbf16, #tpu.memory_space<vmem>>, vector<128x128xbf16>,
    %21 = arith.truncf %16 : vector<128x128xf32> to vector<128x128xbf16>
    %22 = arith.index_cast %18 : i32 to index
    %c0_14 = arith.constant 0 : index
    %23 = vector.load %arg11[%22, %c0_14] : memref<128x128xbf16, #tpu.memory_space<vmem>>, vector<128x128xbf16>
    tpu.vector_store %arg11[%22, %c0_14], %21 {strides = array<i32>} : memref<128x128xbf16, #tpu.memory_space<vmem>>, vector<128x128xbf16>,
    %c0_15 = arith.constant 0 : index
    %c0_16 = arith.constant 0 : index
    %24 = vector.load %arg12[%c0_15, %c0_16] : memref<1x128xf32, #tpu.memory_space<vmem>>, vector<1x128xf32>
    %25 = arith.extf %0 : vector<128x128xbf16> to vector<128x128xf32>
    %cst_17 = arith.constant dense<0.000000e+00> : vector<128xf32>
    %26 = vector.multi_reduction <add>, %25, %cst_17 [0] : vector<128x128xf32> to vector<128xf32>
    %27 = vector.shape_cast %26 : vector<128xf32> to vector<1x128xf32>
    %28 = arith.addf %24, %27 : vector<1x128xf32>
    %c0_18 = arith.constant 0 : index
    %c0_19 = arith.constant 0 : index
    %29 = vector.load %arg12[%c0_18, %c0_19] : memref<1x128xf32, #tpu.memory_space<vmem>>, vector<1x128xf32>
    tpu.vector_store %arg12[%c0_18, %c0_19], %28 {strides = array<i32>} : memref<1x128xf32, #tpu.memory_space<vmem>>, vector<1x128xf32>,
    %c0_i32_20 = arith.constant 0 : i32
    %30 = arith.cmpi eq, %arg0, %c0_i32_20 : i32
    %31 = arith.extui %30 : i1 to i32
    %c0_i32_21 = arith.constant 0 : i32
    %32 = arith.cmpi ne, %31, %c0_i32_21 : i32
    scf.if %32 {
      %c0_22 = arith.constant 0 : index
      %c0_23 = arith.constant 0 : index
      %33 = vector.load %arg10[%c0_22, %c0_23] : memref<128x128xbf16, #tpu.memory_space<vmem>>, vector<128x128xbf16>
      %c0_24 = arith.constant 0 : index
      %c0_25 = arith.constant 0 : index
      %34 = vector.load %arg11[%c0_24, %c0_25] : memref<128x128xbf16, #tpu.memory_space<vmem>>, vector<128x128xbf16>
      %cst_26 = arith.constant dense<0.000000e+00> : vector<128x128xf32>
      %35 = tpu.matmul %33, %34, %cst_26 {dimension_numbers = #tpu.dot_dimension_numbers<[1], [0], [0], [1], [0, 0, 1, 1], [], []>} : vector<128x128xbf16>, vector<128x128xbf16>, vector<128x128xf32> -> vector<128x128xf32>
      %c0_27 = arith.constant 0 : index
      %c0_28 = arith.constant 0 : index
      %36 = vector.load %arg6[%c0_27, %c0_28] : memref<1x128xf32, #tpu.memory_space<vmem>>, vector<1x128xf32>
      %37 = vector.broadcast %36 : vector<1x128xf32> to vector<128x128xf32>
      %38 = arith.addf %35, %37 : vector<128x128xf32>
      %cst_29 = arith.constant 0.000000e+00 : f32
      %39 = vector.broadcast %cst_29 : f32 to vector<128x128xf32>
      %40 = arith.maximumf %38, %39 : vector<128x128xf32>
      %c0_30 = arith.constant 0 : index
      %c0_31 = arith.constant 0 : index
      %41 = vector.load %arg12[%c0_30, %c0_31] : memref<1x128xf32, #tpu.memory_space<vmem>>, vector<1x128xf32>
      %cst_32 = arith.constant 1.250000e-01 : f32
      %42 = vector.broadcast %cst_32 : f32 to vector<1x128xf32>
      %43 = arith.mulf %41, %42 : vector<1x128xf32>
      %cst_33 = arith.constant dense<0.000000e+00> : vector<1x128xf32>
      %44 = tpu.matmul %43, %40, %cst_33 {dimension_numbers = #tpu.dot_dimension_numbers<[1], [0], [0], [1], [0, 0, 1, 1], [], []>} : vector<1x128xf32>, vector<128x128xf32>, vector<1x128xf32> -> vector<1x128xf32>
      %c0_34 = arith.constant 0 : index
      %c0_35 = arith.constant 0 : index
      %45 = vector.load %arg7[%c0_34, %c0_35] : memref<128x128xbf16, #tpu.memory_space<vmem>>, vector<128x128xbf16>
      %46 = arith.extf %45 : vector<128x128xbf16> to vector<128x128xf32>
      %cst_36 = arith.constant dense<0.000000e+00> : vector<1x128xf32>
      %47 = tpu.matmul %44, %46, %cst_36 {dimension_numbers = #tpu.dot_dimension_numbers<[1], [0], [0], [1], [0, 0, 1, 1], [], []>} : vector<1x128xf32>, vector<128x128xf32>, vector<1x128xf32> -> vector<1x128xf32>
      %c0_37 = arith.constant 0 : index
      %c0_38 = arith.constant 0 : index
      %48 = vector.load %arg8[%c0_37, %c0_38] : memref<1x128xf32, #tpu.memory_space<vmem>>, vector<1x128xf32>
      %49 = arith.addf %47, %48 : vector<1x128xf32>
      %c0_39 = arith.constant 0 : index
      %c0_40 = arith.constant 0 : index
      %50 = vector.load %arg9[%c0_39, %c0_40] : memref<1x128xf32, #tpu.memory_space<vmem>>, vector<1x128xf32>
      tpu.vector_store %arg9[%c0_39, %c0_40], %49 {strides = array<i32>} : memref<1x128xf32, #tpu.memory_space<vmem>>, vector<1x128xf32>,
    } else {
    }
    return
  }
  func.func @transform_0(%arg0: i32) -> (i32, i32) {
    %c0_i32 = arith.constant 0 : i32
    %c0_i32_0 = arith.constant 0 : i32
    return %arg0, %c0_i32 : i32, i32
  }
  func.func @transform_1(%arg0: i32) -> (i32, i32) {
    %c0_i32 = arith.constant 0 : i32
    %c0_i32_0 = arith.constant 0 : i32
    %c0_i32_1 = arith.constant 0 : i32
    return %c0_i32, %c0_i32_0 : i32, i32
  }
  func.func @transform_2(%arg0: i32) -> (i32, i32) {
    %c0_i32 = arith.constant 0 : i32
    %c0_i32_0 = arith.constant 0 : i32
    %c0_i32_1 = arith.constant 0 : i32
    return %c0_i32, %c0_i32_0 : i32, i32
  }
  func.func @transform_3(%arg0: i32) -> (i32, i32) {
    %c0_i32 = arith.constant 0 : i32
    %c0_i32_0 = arith.constant 0 : i32
    %c0_i32_1 = arith.constant 0 : i32
    return %c0_i32, %c0_i32_0 : i32, i32
  }
  func.func @transform_4(%arg0: i32) -> (i32, i32) {
    %c0_i32 = arith.constant 0 : i32
    %c0_i32_0 = arith.constant 0 : i32
    %c0_i32_1 = arith.constant 0 : i32
    return %c0_i32, %c0_i32_0 : i32, i32
  }
  func.func @transform_5(%arg0: i32) -> (i32, i32) {
    %c0_i32 = arith.constant 0 : i32
    %c0_i32_0 = arith.constant 0 : i32
    %c0_i32_1 = arith.constant 0 : i32
    return %c0_i32, %c0_i32_0 : i32, i32
  }
  func.func @transform_6(%arg0: i32) -> (i32, i32) {
    %c0_i32 = arith.constant 0 : i32
    %c0_i32_0 = arith.constant 0 : i32
    %c0_i32_1 = arith.constant 0 : i32
    return %c0_i32, %c0_i32_0 : i32, i32
  }
  func.func @transform_7(%arg0: i32) -> (i32, i32) {
    %c0_i32 = arith.constant 0 : i32
    %c0_i32_0 = arith.constant 0 : i32
    %c0_i32_1 = arith.constant 0 : i32
    return %c0_i32, %c0_i32_0 : i32, i32
  }
  func.func @transform_8(%arg0: i32) -> (i32, i32) {
    %c0_i32 = arith.constant 0 : i32
    %c0_i32_0 = arith.constant 0 : i32
    %c0_i32_1 = arith.constant 0 : i32
    return %c0_i32, %c0_i32_0 : i32, i32
  }
}

</mosaic_0001>

<bundles_post_ra>
// kernel: tpu_custom_call.1
= control target key start
LH: loop header
LB: loop body
LE: loop exit
PB: predicated region body
PF: predicated region fallthrough
CT: control target
= control target key end

     0   :  { %13 = vsyncpa [#allocation6], 0  ;;  %s1555_s0 = inlined_call_operand.hbm [shape: bf16[128,128], index: 0, kind: input, shape index: {}]   ;;  %s1556_s1 = inlined_call_operand.hbm [shape: bf16[128,128], index: 1, kind: input, shape index: {}]   ;;  %s1557_s2 = inlined_call_operand.hbm [shape: bf16[128,128], index: 2, kind: input, shape index: {}]   ;;  %s1558_s3 = inlined_call_operand.vmem [shape: f32[1,128], index: 3, kind: input, shape index: {}]   ;;  %s1559_s4 = inlined_call_operand.hbm [shape: bf16[128,128], index: 4, kind: input, shape index: {}]   ;;  %s1560_s5 = inlined_call_operand.vmem [shape: f32[1,128], index: 5, kind: input, shape index: {}]   ;;  %s1561_s6 = inlined_call_operand.hbm [shape: bf16[128,128], index: 6, kind: input, shape index: {}]   ;;  %s1562_s7 = inlined_call_operand.vmem [shape: f32[1,128], index: 7, kind: input, shape index: {}]   ;;  %s1563_s8 = inlined_call_operand.hbm [shape: f32[1,128], index: 8, kind: output, shape index: {}]  }
   0x1   :  { %14 = vsyncpa [#allocation9], 0 }
   0x2   :  { %15 = vsyncpa [#allocation12], 0 }
   0x3   :  { %16 = vsyncpa [#allocation7], 0  ;;  %s34_s29 = sshll.u32 %s1556_s1, 4  ;;  %s1435_s30 = smov [#allocation8]   ;;  %s35_s29 = int_to_ptr.hbm [resolvable:$true] %s34_s29 }
   0x4   :  { %s36_s9 = sshll.u32 %s1435_s30, 4  ;;  %s62_s12 = sshll.u32 %s1559_s4, 4  ;;  %s37_s9 = int_to_ptr.vmem [resolvable:$true] %s36_s9  ;;  %s63_s12 = int_to_ptr.hbm [resolvable:$true] %s62_s12 }
   0x5   :  { %s1436_s13 = smov 64   ;;  %s1437_s14 = smov 4  }
   0x6   :  { %42 = dma.hbm_to_vmem [thread:$0]  %s35_s29, 1024, %s37_s9, [#allocation9], %s1436_s13, %s1436_s13, %s1437_s14  }
   0x7   :  { %s1438_s15 = smov [#allocation11]   ;;  %s21_s19 = sshll.u32 %s1555_s0, 4  ;;  %s22_s19 = int_to_ptr.hbm [resolvable:$true] %s21_s19 }
   0x8   :  { %s64_s16 = sshll.u32 %s1438_s15, 4  ;;  %s47_s21 = sshll.u32 %s1557_s2, 4  ;;  %s65_s16 = int_to_ptr.vmem [resolvable:$true] %s64_s16  ;;  %s48_s21 = int_to_ptr.hbm [resolvable:$true] %s47_s21 }
   0x9   :  { %70 = dma.hbm_to_vmem [thread:$0]  %s63_s12, 1024, %s65_s16, [#allocation12], %s1436_s13, %s1436_s13, %s1437_s14  }
   0xa   :  { %s1439_s22 = smov [#allocation5]   ;;  %s1440_s4 = smov [#allocation10]  }
   0xb   :  { %s23_s23 = sshll.u32 %s1439_s22, 4  ;;  %s49_s24 = sshll.u32 %s1440_s4, 4  ;;  %s24_s23 = int_to_ptr.vmem [resolvable:$true] %s23_s23  ;;  %s50_s24 = int_to_ptr.vmem [resolvable:$true] %s49_s24 }
   0xc   :  { %29 = dma.hbm_to_vmem [thread:$0]  %s22_s19, 1024, %s24_s23, [#allocation6], %s1436_s13, %s1436_s13, %s1437_s14  }
   0xd   :  { %s77_s27 = sshll.u32 %s1561_s6, 4  ;;  %s1441_s0 = smov [#allocation13]   ;;  %s78_s27 = int_to_ptr.hbm [resolvable:$true] %s77_s27 }
   0xe   :  { %55 = dma.hbm_to_vmem [thread:$0]  %s48_s21, 1024, %s50_s24, [#allocation9], %s1436_s13, %s1436_s13, %s1437_s14  }
   0xf   :  { %s79_s28 = sshll.u32 %s1441_s0, 4  ;;  %s80_s28 = int_to_ptr.vmem [resolvable:$true] %s79_s28 }
  0x10   :  { %85 = dma.hbm_to_vmem [thread:$0]  %s78_s27, 1024, %s80_s28, [#allocation12], %s1436_s13, %s1436_s13, %s1437_s14  }
  0x11   :  { %1427 = dma.done.wait [#allocation6], 1024  }
  0x12   :  { %1428 = vsyncadd [#allocation6], 4294966272 }
  0x13   :  { %1429 = dma.done.wait [#allocation9], 2048  }
  0x14   :  { %1430 = vsyncadd [#allocation9], 4294965248 }
  0x15   :  { %1431 = dma.done.wait [#allocation12], 2048  }
  0x16   :  { %1432 = vsyncadd [#allocation12], 4294965248  ;;  %v1153_v0 = vld [vmem:[#allocation8 + $0x38] sm:$0xff]  ;;  %v1152_v1 = vld [vmem:[#allocation8 + $0x30] sm:$0xff]  ;;  %s1443_s9 = smov [#allocation14]   ;;  %s930_s13 = sshll.u32 %s1563_s8, 4  ;;  %s931_s13 = int_to_ptr.hbm [resolvable:$true] %s930_s13 }
  0x17   :  { %241 = vmatpush.bf16.msra.mxu0 %v1153_v0  ;;  %v1151_v2 = vld [vmem:[#allocation8 + $0x28] sm:$0xff]  ;;  %v1150_v3 = vld [vmem:[#allocation8 + $0x20] sm:$0xff]  ;;  %v1149_v4 = vld [vmem:[#allocation8 + $0x18] sm:$0xff]  ;;  %s928_s10 = sshll.u32 %s1443_s9, 4  ;;  %s929_s10 = int_to_ptr.vmem [resolvable:$true] %s928_s10 }
  0x18   :  { %v1148_v5 = vld [vmem:[#allocation8 + $0x10] sm:$0xff]  ;;  %v1147_v6 = vld [vmem:[#allocation8 + $0x8] sm:$0xff]  ;;  %v1146_v7 = vld [vmem:[#allocation8] sm:$0xff] }
  0x19   :  { %v1138_v8 = vld [vmem:[#allocation5] sm:$0xff]  ;;  %v1139_v9 = vld [vmem:[#allocation5 + $0x8] sm:$0xff]  ;;  %v1140_v10 = vld [vmem:[#allocation5 + $0x10] sm:$0xff] }
  0x1a   :  { %v1141_v11 = vld [vmem:[#allocation5 + $0x18] sm:$0xff]  ;;  %v1142_v12 = vld [vmem:[#allocation5 + $0x20] sm:$0xff]  ;;  %v1160_v14 = vld [vmem:[#allocation10 + $0x30] sm:$0xff] }
  0x1b   :  { %242 = vmatpush.bf16.msra.mxu0 %v1152_v1  ;;  %v1161_v13 = vld [vmem:[#allocation10 + $0x38] sm:$0xff]  ;;  %v1143_v15 = vld [vmem:[#allocation5 + $0x28] sm:$0xff]  ;;  %v1158_v17 = vld [vmem:[#allocation10 + $0x20] sm:$0xff] }
  0x1c   :  { %366 = vmatpush.bf16.msra.mxu1 %v1161_v13  ;;  %v1159_v16 = vld [vmem:[#allocation10 + $0x28] sm:$0xff]  ;;  %v1157_v18 = vld [vmem:[#allocation10 + $0x18] sm:$0xff]  ;;  %v1156_v19 = vld [vmem:[#allocation10 + $0x10] sm:$0xff] }
  0x1d   :  { %v1144_v20 = vld [vmem:[#allocation5 + $0x30] sm:$0xff]  ;;  %v1155_v21 = vld [vmem:[#allocation10 + $0x8] sm:$0xff]  ;;  %v1154_v22 = vld [vmem:[#allocation10] sm:$0xff] }
  0x1e   :  { %v1145_v23 = vld [vmem:[#allocation5 + $0x38] sm:$0xff]  ;;  %v1168_v43 = vld [vmem:[#allocation11 + $0x30] sm:$0xff]  ;;  %v1167_v44 = vld [vmem:[#allocation11 + $0x28] sm:$0xff] }
  0x1f   :  { %243 = vmatpush.bf16.msra.mxu0 %v1151_v2  ;;  %v1169_v40 = vld [vmem:[#allocation11 + $0x38] sm:$0xff]  ;;  %v1166_v46 = vld [vmem:[#allocation11 + $0x20] sm:$0xff]  ;;  %v1164_v50 = vld [vmem:[#allocation11 + $0x10] sm:$0xff] }
  0x20   :  { %367 = vmatpush.bf16.msra.mxu1 %v1160_v14  ;;  %503 = vmatpush.bf16.msra.mxu2 %v1169_v40  ;;  %v1165_v47 = vld [vmem:[#allocation11 + $0x18] sm:$0xff]  ;;  %v1163_v51 = vld [vmem:[#allocation11 + $0x8] sm:$0xff]  ;;  %v1162_v53 = vld [vmem:[#allocation11] sm:$0xff] }
  0x21   :  { %v1281_v57 = vld [vmem:[%s1558_s3] ss:$0 sm:$0xff] }
  0x23   :  { %244 = vmatpush.bf16.msra.mxu0 %v1150_v3 }
  0x24   :  { %368 = vmatpush.bf16.msra.mxu1 %v1159_v16  ;;  %504 = vmatpush.bf16.msra.mxu2 %v1168_v43 }
  0x27   :  { %245 = vmatpush.bf16.msra.mxu0 %v1149_v4 }
  0x28   :  { %369 = vmatpush.bf16.msra.mxu1 %v1158_v17  ;;  %505 = vmatpush.bf16.msra.mxu2 %v1167_v44 }
  0x2b   :  { %246 = vmatpush.bf16.msra.mxu0 %v1148_v5 }
  0x2c   :  { %370 = vmatpush.bf16.msra.mxu1 %v1157_v18  ;;  %506 = vmatpush.bf16.msra.mxu2 %v1166_v46 }
  0x2f   :  { %247 = vmatpush.bf16.msra.mxu0 %v1147_v6 }
  0x30   :  { %371 = vmatpush.bf16.msra.mxu1 %v1156_v19  ;;  %507 = vmatpush.bf16.msra.mxu2 %v1165_v47 }
  0x33   :  { %248 = vmatpush.bf16.msra.mxu0 %v1146_v7 }
  0x34   :  { %372 = vmatpush.bf16.msra.mxu1 %v1155_v21  ;;  %508 = vmatpush.bf16.msra.mxu2 %v1164_v50 }
  0x36   :  { %249 = vmatmul.bf16.vlgmr.msra.gmra.mxu0 %v1138_v8 }
  0x38   :  { %373 = vmatpush.bf16.msra.mxu1 %v1154_v22  ;;  %509 = vmatpush.bf16.msra.mxu2 %v1163_v51 }
  0x3c   :  { %510 = vmatpush.bf16.msra.mxu2 %v1162_v53 }
  0x46   :  { %254 = vmatmul.bf16.gmra.mxu0 %v1139_v9 }
  0x56   :  { %259 = vmatmul.bf16.gmra.mxu0 %v1140_v10 }
  0x66   :  { %264 = vmatmul.bf16.gmra.mxu0 %v1141_v11 }
  0x76   :  { %269 = vmatmul.bf16.gmra.mxu0 %v1142_v12 }
  0x86   :  { %274 = vmatmul.bf16.gmra.mxu0 %v1143_v15 }
  0x96   :  { %279 = vmatmul.bf16.gmra.mxu0 %v1144_v20 }
  0xa6   :  { %284 = vmatmul.bf16.gmra.mxu0 %v1145_v23 }
  0xb3   :  { %v250_v24 = vpop.f32.mrf.mxu0 }
  0xbb   :  { %v252_v25 = vpop.f32.mrf.mxu0 }
  0xbc   :  { %v290_v26 = vpack.c.bf16 %v252_v25, %v250_v24 }
  0xbe   :  { %374 = vmatmul.bf16.vlgmr.msra.gmra.mxu1 %v290_v26 }
  0xc3   :  { %v255_v27 = vpop.f32.mrf.mxu0 }
  0xcb   :  { %v257_v28 = vpop.f32.mrf.mxu0 }
  0xcc   :  { %v291_v29 = vpack.c.bf16 %v257_v28, %v255_v27 }
  0xce   :  { %379 = vmatmul.bf16.gmra.mxu1 %v291_v29 }
  0xd3   :  { %v260_v30 = vpop.f32.mrf.mxu0 }
  0xdb   :  { %v262_v31 = vpop.f32.mrf.mxu0 }
  0xdc   :  { %v292_v32 = vpack.c.bf16 %v262_v31, %v260_v30 }
  0xde   :  { %384 = vmatmul.bf16.gmra.mxu1 %v292_v32 }
  0xe3   :  { %v265_v33 = vpop.f32.mrf.mxu0 }
  0xeb   :  { %v267_v34 = vpop.f32.mrf.mxu0 }
  0xec   :  { %v293_v35 = vpack.c.bf16 %v267_v34, %v265_v33 }
  0xee   :  { %389 = vmatmul.bf16.gmra.mxu1 %v293_v35 }
  0xf3   :  { %v270_v36 = vpop.f32.mrf.mxu0 }
  0xfb   :  { %v272_v37 = vpop.f32.mrf.mxu0 }
  0xfc   :  { %v294_v38 = vpack.c.bf16 %v272_v37, %v270_v36 }
  0xfe   :  { %394 = vmatmul.bf16.gmra.mxu1 %v294_v38 }
 0x103   :  { %v275_v39 = vpop.f32.mrf.mxu0 }
 0x10b   :  { %v277_v41 = vpop.f32.mrf.mxu0 }
 0x10c   :  { %v295_v42 = vpack.c.bf16 %v277_v41, %v275_v39 }
 0x10e   :  { %399 = vmatmul.bf16.gmra.mxu1 %v295_v42 }
 0x113   :  { %v280_v45 = vpop.f32.mrf.mxu0 }
 0x11b   :  { %v282_v48 = vpop.f32.mrf.mxu0 }
 0x11c   :  { %v296_v49 = vpack.c.bf16 %v282_v48, %v280_v45 }
 0x11e   :  { %404 = vmatmul.bf16.gmra.mxu1 %v296_v49 }
 0x123   :  { %v285_v52 = vpop.f32.mrf.mxu0 }
 0x12b   :  { %v287_v54 = vpop.f32.mrf.mxu0 }
 0x12c   :  { %v297_v55 = vpack.c.bf16 %v287_v54, %v285_v52 }
 0x12e   :  { %409 = vmatmul.bf16.gmra.mxu1 %v297_v55 }
 0x13b   :  { %v375_v56 = vpop.f32.mrf.mxu1 }
 0x13c   :  { %v376_v58 = vadd.f32 %v1281_v57, %v375_v56 }
 0x13e   :  { %v415_v61 = vmax.f32 %v376_v58, 0.0 }
 0x143   :  { %v377_v59 = vpop.f32.mrf.mxu1 }
 0x144   :  { %v378_v60 = vadd.f32 %v1281_v57, %v377_v59 }
 0x146   :  { %v416_v62 = vmax.f32 %v378_v60, 0.0 }
 0x148   :  { %v431_v63 = vpack.c.bf16 %v416_v62, %v415_v61 }
 0x14a   :  { %511 = vmatmul.bf16.vlgmr.msra.gmra.mxu2 %v431_v63 }
 0x14b   :  { %v380_v0 = vpop.f32.mrf.mxu1 }
 0x14c   :  { %v381_v1 = vadd.f32 %v1281_v57, %v380_v0 }
 0x14e   :  { %v417_v4 = vmax.f32 %v381_v1, 0.0 }
 0x153   :  { %v382_v2 = vpop.f32.mrf.mxu1 }
 0x154   :  { %v383_v3 = vadd.f32 %v1281_v57, %v382_v2 }
 0x156   :  { %v418_v5 = vmax.f32 %v383_v3, 0.0 }
 0x158   :  { %v432_v6 = vpack.c.bf16 %v418_v5, %v417_v4 }
 0x15a   :  { %516 = vmatmul.bf16.gmra.mxu2 %v432_v6 }
 0x15b   :  { %v385_v7 = vpop.f32.mrf.mxu1 }
 0x15c   :  { %v386_v8 = vadd.f32 %v1281_v57, %v385_v7 }
 0x15e   :  { %v419_v11 = vmax.f32 %v386_v8, 0.0 }
 0x163   :  { %v387_v9 = vpop.f32.mrf.mxu1 }
 0x164   :  { %v388_v10 = vadd.f32 %v1281_v57, %v387_v9  ;;  %v108_v9 = vld [vmem:[#allocation5] sm:$0xf] }
 0x165   :  { %557 = vst [vmem:[#allocation2] sm:$0xf] %v108_v9 }
 0x166   :  { %v420_v12 = vmax.f32 %v388_v10, 0.0  ;;  %v109_v10 = vld [vmem:[#allocation5 + $0x4] sm:$0xf] }
 0x167   :  { %558 = vst [vmem:[#allocation2 + $0x4] sm:$0xf] %v109_v10 }
 0x168   :  { %v433_v13 = vpack.c.bf16 %v420_v12, %v419_v11  ;;  %v608_v11 = vunpack.c.l.bf16 %v108_v9  ;;  %v609_v12 = vunpack.c.l.bf16 %v109_v10 }
 0x16a   :  { %521 = vmatmul.bf16.gmra.mxu2 %v433_v13 }
 0x16b   :  { %v390_v14 = vpop.f32.mrf.mxu1 }
 0x16c   :  { %v391_v15 = vadd.f32 %v1281_v57, %v390_v14  ;;  %v624_v14 = vadd.f32 %v609_v12, %v608_v11 }
 0x16e   :  { %v421_v18 = vmax.f32 %v391_v15, 0.0  ;;  %v110_v15 = vld [vmem:[#allocation5 + $0x8] sm:$0xf] }
 0x16f   :  { %559 = vst [vmem:[#allocation2 + $0x8] sm:$0xf] %v110_v15 }
 0x173   :  { %v392_v16 = vpop.f32.mrf.mxu1 }
 0x174   :  { %v393_v17 = vadd.f32 %v1281_v57, %v392_v16  ;;  %v111_v16 = vld [vmem:[#allocation5 + $0xc] sm:$0xf] }
 0x175   :  { %560 = vst [vmem:[#allocation2 + $0xc] sm:$0xf] %v111_v16 }
 0x176   :  { %v422_v19 = vmax.f32 %v393_v17, 0.0  ;;  %v610_v17 = vunpack.c.l.bf16 %v110_v15 }
 0x178   :  { %v434_v20 = vpack.c.bf16 %v422_v19, %v421_v18  ;;  %v611_v18 = vunpack.c.l.bf16 %v111_v16 }
 0x17a   :  { %526 = vmatmul.bf16.gmra.mxu2 %v434_v20  ;;  %v625_v20 = vadd.f32 %v624_v14, %v610_v17 }
 0x17b   :  { %v395_v21 = vpop.f32.mrf.mxu1 }
 0x17c   :  { %v396_v22 = vadd.f32 %v1281_v57, %v395_v21  ;;  %v626_v21 = vadd.f32 %v625_v20, %v611_v18 }
 0x17e   :  { %v423_v25 = vmax.f32 %v396_v22, 0.0 }
 0x183   :  { %v397_v23 = vpop.f32.mrf.mxu1 }
 0x184   :  { %v398_v24 = vadd.f32 %v1281_v57, %v397_v23 }
 0x186   :  { %v424_v26 = vmax.f32 %v398_v24, 0.0 }
 0x188   :  { %v435_v27 = vpack.c.bf16 %v424_v26, %v423_v25  ;;  %v112_v25 = vld [vmem:[#allocation5 + $0x10] sm:$0xf]  ;;  %v113_v26 = vld [vmem:[#allocation5 + $0x14] sm:$0xf] }
 0x189   :  { %561 = vst [vmem:[#allocation2 + $0x10] sm:$0xf] %v112_v25 }
 0x18a   :  { %531 = vmatmul.bf16.gmra.mxu2 %v435_v27  ;;  %v612_v27 = vunpack.c.l.bf16 %v112_v25  ;;  %562 = vst [vmem:[#allocation2 + $0x14] sm:$0xf] %v113_v26 }
 0x18b   :  { %v400_v28 = vpop.f32.mrf.mxu1 }
 0x18c   :  { %v401_v29 = vadd.f32 %v1281_v57, %v400_v28  ;;  %v613_v28 = vunpack.c.l.bf16 %v113_v26  ;;  %v1442_v26 = vmov 0.0  }
 0x18d   :  { %128 = vst [vmem:[#allocation4] sm:$0x1] %v1442_v26 }
 0x18e   :  { %v425_v32 = vmax.f32 %v401_v29, 0.0 }
 0x193   :  { %v402_v30 = vpop.f32.mrf.mxu1 }
 0x194   :  { %v403_v31 = vadd.f32 %v1281_v57, %v402_v30  ;;  %v627_v30 = vadd.f32 %v626_v21, %v612_v27 }
 0x196   :  { %v426_v33 = vmax.f32 %v403_v31, 0.0  ;;  %v628_v31 = vadd.f32 %v627_v30, %v613_v28 }
 0x198   :  { %v436_v34 = vpack.c.bf16 %v426_v33, %v425_v32 }
 0x19a   :  { %536 = vmatmul.bf16.gmra.mxu2 %v436_v34  ;;  %v1170_v34 = vld [vmem:[#allocation2] sm:$0xff] }
 0x19b   :  { %v405_v35 = vpop.f32.mrf.mxu1 }
 0x19c   :  { %v406_v36 = vadd.f32 %v1281_v57, %v405_v35  ;;  %v114_v35 = vld [vmem:[#allocation5 + $0x18] sm:$0xf] }
 0x19d   :  { %563 = vst [vmem:[#allocation2 + $0x18] sm:$0xf] %v114_v35 }
 0x19e   :  { %v427_v39 = vmax.f32 %v406_v36, 0.0  ;;  %v115_v36 = vld [vmem:[#allocation5 + $0x1c] sm:$0xf] }
 0x19f   :  { %564 = vst [vmem:[#allocation2 + $0x1c] sm:$0xf] %v115_v36 }
 0x1a3   :  { %v407_v37 = vpop.f32.mrf.mxu1 }
 0x1a4   :  { %v408_v38 = vadd.f32 %v1281_v57, %v407_v37  ;;  %v614_v37 = vunpack.c.l.bf16 %v114_v35 }
 0x1a6   :  { %v428_v40 = vmax.f32 %v408_v38, 0.0  ;;  %v615_v38 = vunpack.c.l.bf16 %v115_v36 }
 0x1a8   :  { %v437_v41 = vpack.c.bf16 %v428_v40, %v427_v39  ;;  %v629_v39 = vadd.f32 %v628_v31, %v614_v37 }
 0x1aa   :  { %541 = vmatmul.bf16.gmra.mxu2 %v437_v41  ;;  %v630_v40 = vadd.f32 %v629_v39, %v615_v38  ;;  %v1171_v41 = vld [vmem:[#allocation2 + $0x8] sm:$0xff]  ;;  %v1271_v38 = vld [vmem:[#allocation13 + $0x38] sm:$0xff]  }
 0x1ab   :  { %v410_v42 = vpop.f32.mrf.mxu1  ;;  %v1257_v39 = vunpack.c.h.bf16 %v1271_v38 }
 0x1ac   :  { %v411_v43 = vadd.f32 %v1281_v57, %v410_v42  ;;  %v116_v42 = vld [vmem:[#allocation5 + $0x20] sm:$0xf] }
 0x1ad   :  { %565 = vst [vmem:[#allocation2 + $0x20] sm:$0xf] %v116_v42  ;;  %902 = vmatpush.msrb.mxu1 %v1257_v39 }
 0x1ae   :  { %v429_v46 = vmax.f32 %v411_v43, 0.0  ;;  %v117_v43 = vld [vmem:[#allocation5 + $0x24] sm:$0xf] }
 0x1af   :  { %566 = vst [vmem:[#allocation2 + $0x24] sm:$0xf] %v117_v43 }
 0x1b3   :  { %v412_v44 = vpop.f32.mrf.mxu1 }
 0x1b4   :  { %v413_v45 = vadd.f32 %v1281_v57, %v412_v44  ;;  %v616_v44 = vunpack.c.l.bf16 %v116_v42 }
 0x1b6   :  { %v430_v47 = vmax.f32 %v413_v45, 0.0  ;;  %v617_v45 = vunpack.c.l.bf16 %v117_v43 }
 0x1b8   :  { %v438_v48 = vpack.c.bf16 %v430_v47, %v429_v46  ;;  %v631_v46 = vadd.f32 %v630_v40, %v616_v44  ;;  %v1256_v40 = vunpack.c.l.bf16 %v1271_v38 }
 0x1ba   :  { %546 = vmatmul.bf16.gmra.mxu2 %v438_v48  ;;  %v632_v47 = vadd.f32 %v631_v46, %v617_v45  ;;  %v1172_v48 = vld [vmem:[#allocation2 + $0x10] sm:$0xff]  ;;  %903 = vmatpush.msrb.mxu1 %v1256_v40 }
 0x1cd   :  { %v512_v49 = vpop.f32.mrf.mxu2 }
 0x1d5   :  { %v514_v50 = vpop.f32.mrf.mxu2 }
 0x1d6   :  { %v1189_v51 = vpack.c.bf16 %v514_v50, %v512_v49  ;;  %v118_v49 = vld [vmem:[#allocation5 + $0x28] sm:$0xf]  ;;  %v119_v50 = vld [vmem:[#allocation5 + $0x2c] sm:$0xf] }
 0x1d7   :  { %567 = vst [vmem:[#allocation2 + $0x28] sm:$0xf] %v118_v49 }
 0x1d8   :  { %1190 = vst [vmem:[#allocation3 + $0x30] sm:$0xff] %v1189_v51   ;;  %v618_v51 = vunpack.c.l.bf16 %v118_v49 }
 0x1d9   :  { %568 = vst [vmem:[#allocation2 + $0x2c] sm:$0xf] %v119_v50 }
 0x1dd   :  { %v517_v52 = vpop.f32.mrf.mxu2 }
 0x1df   :  { %v1178_v33 = vld [vmem:[#allocation3 + $0x30] sm:$0xff] }
 0x1e5   :  { %v519_v53 = vpop.f32.mrf.mxu2 }
 0x1e6   :  { %v1194_v54 = vpack.c.bf16 %v519_v53, %v517_v52  ;;  %v619_v52 = vunpack.c.l.bf16 %v119_v50  ;;  %v633_v53 = vadd.f32 %v632_v47, %v618_v51  ;;  %v1269_v47 = vld [vmem:[#allocation13 + $0x28] sm:$0xff]  }
 0x1e7   :  { %v1249_v51 = vunpack.c.h.bf16 %v1269_v47 }
 0x1e8   :  { %1258 = vst [vmem:[#allocation3] sm:$0xff] %v1194_v54   ;;  %v634_v54 = vadd.f32 %v633_v53, %v619_v52 }
 0x1ed   :  { %v522_v55 = vpop.f32.mrf.mxu2 }
 0x1ef   :  { %v1179_v32 = vld [vmem:[#allocation3] sm:$0xff] }
 0x1f5   :  { %v524_v56 = vpop.f32.mrf.mxu2 }
 0x1f6   :  { %v1199_v58 = vpack.c.bf16 %v524_v56, %v522_v55  ;;  %v1173_v55 = vld [vmem:[#allocation2 + $0x18] sm:$0xff]  ;;  %v120_v56 = vld [vmem:[#allocation5 + $0x30] sm:$0xf] }
 0x1f7   :  { %569 = vst [vmem:[#allocation2 + $0x30] sm:$0xf] %v120_v56 }
 0x1f8   :  { %1259 = vst [vmem:[#allocation3 + $0x18] sm:$0xff] %v1199_v58   ;;  %v121_v58 = vld [vmem:[#allocation5 + $0x34] sm:$0xf] }
 0x1f9   :  { %570 = vst [vmem:[#allocation2 + $0x34] sm:$0xf] %v121_v58 }
 0x1fd   :  { %v527_v59 = vpop.f32.mrf.mxu2 }
 0x1ff   :  { %v1180_v29 = vld [vmem:[#allocation3 + $0x18] sm:$0xff] }
 0x205   :  { %v529_v60 = vpop.f32.mrf.mxu2 }
 0x206   :  { %v1204_v61 = vpack.c.bf16 %v529_v60, %v527_v59  ;;  %v620_v59 = vunpack.c.l.bf16 %v120_v56  ;;  %v621_v60 = vunpack.c.l.bf16 %v121_v58 }
 0x208   :  { %1260 = vst [vmem:[#allocation3 + $0x10] sm:$0xff] %v1204_v61   ;;  %v635_v61 = vadd.f32 %v634_v54, %v620_v59  ;;  %v1268_v54 = vld [vmem:[#allocation13 + $0x20] sm:$0xff]  }
 0x209   :  { %v1245_v59 = vunpack.c.h.bf16 %v1268_v54 }
 0x20d   :  { %v532_v57 = vpop.f32.mrf.mxu2 }
 0x20f   :  { %v1181_v24 = vld [vmem:[#allocation3 + $0x10] sm:$0xff] }
 0x215   :  { %v534_v62 = vpop.f32.mrf.mxu2 }
 0x216   :  { %v1209_v63 = vpack.c.bf16 %v534_v62, %v532_v57  ;;  %v636_v57 = vadd.f32 %v635_v61, %v621_v60  ;;  %v1174_v62 = vld [vmem:[#allocation2 + $0x20] sm:$0xff] }
 0x218   :  { %1261 = vst [vmem:[#allocation3 + $0x8] sm:$0xff] %v1209_v63   ;;  %v122_v63 = vld [vmem:[#allocation5 + $0x38] sm:$0xf] }
 0x219   :  { %571 = vst [vmem:[#allocation2 + $0x38] sm:$0xf] %v122_v63 }
 0x21d   :  { %v537_v0 = vpop.f32.mrf.mxu2 }
 0x21f   :  { %v1182_v23 = vld [vmem:[#allocation3 + $0x8] sm:$0xff] }
 0x225   :  { %v539_v1 = vpop.f32.mrf.mxu2 }
 0x226   :  { %v1214_v2 = vpack.c.bf16 %v539_v1, %v537_v0  ;;  %v123_v0 = vld [vmem:[#allocation5 + $0x3c] sm:$0xf]  ;;  %v622_v1 = vunpack.c.l.bf16 %v122_v63 }
 0x227   :  { %572 = vst [vmem:[#allocation2 + $0x3c] sm:$0xf] %v123_v0 }
 0x228   :  { %1262 = vst [vmem:[#allocation3 + $0x20] sm:$0xff] %v1214_v2   ;;  %v623_v2 = vunpack.c.l.bf16 %v123_v0 }
 0x22d   :  { %v542_v3 = vpop.f32.mrf.mxu2 }
 0x22f   :  { %v1183_v22 = vld [vmem:[#allocation3 + $0x20] sm:$0xff] }
 0x235   :  { %v544_v4 = vpop.f32.mrf.mxu2 }
 0x236   :  { %v1219_v5 = vpack.c.bf16 %v544_v4, %v542_v3  ;;  %v637_v3 = vadd.f32 %v636_v57, %v622_v1  ;;  %v1267_v57 = vld [vmem:[#allocation13 + $0x18] sm:$0xff]  }
 0x237   :  { %v1241_v1 = vunpack.c.h.bf16 %v1267_v57 }
 0x238   :  { %1263 = vst [vmem:[#allocation3 + $0x28] sm:$0xff] %v1219_v5   ;;  %v638_v4 = vadd.f32 %v637_v3, %v623_v2  ;;  %v1175_v5 = vld [vmem:[#allocation2 + $0x28] sm:$0xff] }
 0x23a   :  { %v639_v20 = vrot.slane %v638_v4, 4 }
 0x23c   :  { %v640_v21 = vadd.f32 %v639_v20, %v638_v4  ;;  %v1266_v4 = vld [vmem:[#allocation13 + $0x10] sm:$0xff]  }
 0x23d   :  { %v547_v6 = vpop.f32.mrf.mxu2 }
 0x23f   :  { %v1184_v19 = vld [vmem:[#allocation3 + $0x28] sm:$0xff] }
 0x245   :  { %v549_v7 = vpop.f32.mrf.mxu2 }
 0x246   :  { %v1224_v8 = vpack.c.bf16 %v549_v7, %v547_v6  ;;  %v1176_v6 = vld [vmem:[#allocation2 + $0x30] sm:$0xff]  ;;  %v1177_v7 = vld [vmem:[#allocation2 + $0x38] sm:$0xff] }
 0x248   :  { %1264 = vst [vmem:[#allocation3 + $0x38] sm:$0xff] %v1224_v8  }
 0x24f   :  { %v1185_v13 = vld [vmem:[#allocation3 + $0x38] sm:$0xff] }
 0x250   :  { %782 = vmatpush.bf16.msra.mxu3 %v1185_v13 }
 0x254   :  { %783 = vmatpush.bf16.msra.mxu3 %v1184_v19 }
 0x258   :  { %784 = vmatpush.bf16.msra.mxu3 %v1183_v22 }
 0x25c   :  { %785 = vmatpush.bf16.msra.mxu3 %v1182_v23  ;;  %v641_v23 = vrot.slane %v640_v21, 2 }
 0x260   :  { %786 = vmatpush.bf16.msra.mxu3 %v1181_v24  ;;  %v642_v24 = vadd.f32 %v641_v23, %v640_v21 }
 0x262   :  { %v643_v27 = vrot.slane %v642_v24, 1 }
 0x264   :  { %787 = vmatpush.bf16.msra.mxu3 %v1180_v29  ;;  %v644_v28 = vadd.f32 %v643_v27, %v642_v24  ;;  %v607_v29 = vld [vmem:[#allocation4] sm:$0x1] }
 0x266   :  { %v645_v31 = vadd.f32 %v644_v28, %v607_v29 }
 0x268   :  { %788 = vmatpush.bf16.msra.mxu3 %v1179_v32  ;;  %646 = vst [vmem:[#allocation4] sm:$0x1] %v645_v31  ;;  %v1524_v32 = vld [vmem:[%s1560_s5] ss:$0 sm:$0xff] }
 0x26c   :  { %789 = vmatpush.bf16.msra.mxu3 %v1178_v33 }
 0x26f   :  { %790 = vmatmul.bf16.vlgmr.msra.gmra.mxu3 %v1170_v34 }
 0x27f   :  { %795 = vmatmul.bf16.gmra.mxu3 %v1171_v41  ;;  %v1270_v41 = vld [vmem:[#allocation13 + $0x30] sm:$0xff]  }
 0x280   :  { %v1253_v44 = vunpack.c.h.bf16 %v1270_v41 }
 0x282   :  { %904 = vmatpush.msrb.mxu1 %v1253_v44 }
 0x28f   :  { %800 = vmatmul.bf16.gmra.mxu3 %v1172_v48  ;;  %v1252_v48 = vunpack.c.l.bf16 %v1270_v41 }
 0x291   :  { %905 = vmatpush.msrb.mxu1 %v1252_v48 }
 0x293   :  { %906 = vmatpush.msrb.mxu1 %v1249_v51 }
 0x29f   :  { %805 = vmatmul.bf16.gmra.mxu3 %v1173_v55  ;;  %v1248_v55 = vunpack.c.l.bf16 %v1269_v47 }
 0x2a1   :  { %907 = vmatpush.msrb.mxu1 %v1248_v55 }
 0x2a3   :  { %908 = vmatpush.msrb.mxu1 %v1245_v59 }
 0x2af   :  { %810 = vmatmul.bf16.gmra.mxu3 %v1174_v62  ;;  %v1244_v62 = vunpack.c.l.bf16 %v1268_v54 }
 0x2b1   :  { %909 = vmatpush.msrb.mxu1 %v1244_v62 }
 0x2b3   :  { %910 = vmatpush.msrb.mxu1 %v1241_v1 }
 0x2bf   :  { %815 = vmatmul.bf16.gmra.mxu3 %v1175_v5  ;;  %v1240_v5 = vunpack.c.l.bf16 %v1267_v57 }
 0x2c1   :  { %911 = vmatpush.msrb.mxu1 %v1240_v5 }
 0x2cf   :  { %820 = vmatmul.bf16.gmra.mxu3 %v1176_v6 }
 0x2df   :  { %825 = vmatmul.bf16.gmra.mxu3 %v1177_v7 }
 0x2f2   :  { %v1507_v8 = vpop.f32.mrf.mxu3 }
 0x2f3   :  { %v792_v23 = vadd.f32 %v1524_v32, %v1507_v8  ;;  %v901_v8 = vld [vmem:[%s1562_s7] sm:$0x1] }
 0x2f5   :  { %v831_v29 = vmax.f32 %v792_v23, 0.0 }
 0x2fa   :  { %v1509_v9 = vpop.f32.mrf.mxu3 }
 0x302   :  { %v1511_v10 = vpop.f32.mrf.mxu3 }
 0x30a   :  { %v1513_v11 = vpop.f32.mrf.mxu3 }
 0x312   :  { %v1515_v12 = vpop.f32.mrf.mxu3 }
 0x313   :  { %v802_v6 = vadd.f32 %v1524_v32, %v1515_v12  ;;  %v794_v12 = vadd.f32 %v1524_v32, %v1509_v9 }
 0x315   :  { %v832_v26 = vmax.f32 %v794_v12, 0.0 }
 0x31a   :  { %v1517_v13 = vpop.f32.mrf.mxu3 }
 0x31b   :  { %v804_v2 = vadd.f32 %v1524_v32, %v1517_v13  ;;  %v1236_v13 = vunpack.c.l.bf16 %v1266_v4 }
 0x322   :  { %v1519_v14 = vpop.f32.mrf.mxu3 }
 0x323   :  { %v807_v63 = vadd.f32 %v1524_v32, %v1519_v14  ;;  %v799_v14 = vadd.f32 %v1524_v32, %v1513_v11 }
 0x325   :  { %v837_v7 = vmax.f32 %v807_v63, 0.0  ;;  %v834_v21 = vmax.f32 %v799_v14, 0.0 }
 0x32a   :  { %v808_v15 = vpop.f32.mrf.mxu3 }
 0x32b   :  { %v809_v60 = vadd.f32 %v1524_v32, %v808_v15  ;;  %v1237_v15 = vunpack.c.h.bf16 %v1266_v4 }
 0x32d   :  { %v838_v3 = vmax.f32 %v809_v60, 0.0  ;;  %912 = vmatpush.msrb.mxu1 %v1237_v15 }
 0x32f   :  { %913 = vmatpush.msrb.mxu1 %v1236_v13 }
 0x332   :  { %v811_v16 = vpop.f32.mrf.mxu3 }
 0x333   :  { %v812_v56 = vadd.f32 %v1524_v32, %v811_v16  ;;  %v836_v16 = vmax.f32 %v804_v2, 0.0 }
 0x335   :  { %v839_v0 = vmax.f32 %v812_v56, 0.0 }
 0x33a   :  { %v813_v17 = vpop.f32.mrf.mxu3 }
 0x33b   :  { %v814_v52 = vadd.f32 %v1524_v32, %v813_v17  ;;  %v1265_v17 = vld [vmem:[#allocation13 + $0x8] sm:$0xff]  }
 0x33c   :  { %v1233_v20 = vunpack.c.h.bf16 %v1265_v17  ;;  %v1232_v11 = vunpack.c.l.bf16 %v1265_v17 }
 0x33d   :  { %v840_v61 = vmax.f32 %v814_v52, 0.0 }
 0x33e   :  { %914 = vmatpush.msrb.mxu1 %v1233_v20 }
 0x340   :  { %915 = vmatpush.msrb.mxu1 %v1232_v11 }
 0x342   :  { %v816_v18 = vpop.f32.mrf.mxu3 }
 0x343   :  { %v817_v49 = vadd.f32 %v1524_v32, %v816_v18  ;;  %v797_v18 = vadd.f32 %v1524_v32, %v1511_v10 }
 0x345   :  { %v841_v58 = vmax.f32 %v817_v49, 0.0  ;;  %v833_v24 = vmax.f32 %v797_v18, 0.0 }
 0x34a   :  { %v818_v19 = vpop.f32.mrf.mxu3 }
 0x34b   :  { %v819_v45 = vadd.f32 %v1524_v32, %v818_v19  ;;  %v835_v19 = vmax.f32 %v802_v6, 0.0 }
 0x34d   :  { %v842_v53 = vmax.f32 %v819_v45, 0.0 }
 0x352   :  { %v821_v22 = vpop.f32.mrf.mxu3 }
 0x353   :  { %v822_v42 = vadd.f32 %v1524_v32, %v821_v22  ;;  %v1227_v22 = vld [vmem:[#allocation13] sm:$0xff]  }
 0x354   :  { %v1229_v10 = vunpack.c.h.bf16 %v1227_v22  ;;  %v1228_v28 = vunpack.c.l.bf16 %v1227_v22 }
 0x355   :  { %v843_v50 = vmax.f32 %v822_v42, 0.0 }
 0x356   :  { %916 = vmatpush.msrb.mxu1 %v1229_v10 }
 0x358   :  { %917 = vmatpush.msrb.mxu1 %v1228_v28 }
 0x35a   :  { %v823_v25 = vpop.f32.mrf.mxu3 }
 0x35b   :  { %v824_v36 = vadd.f32 %v1524_v32, %v823_v25  ;;  %v847_v25 = vld [vmem:[#allocation4] sm:$0x1] }
 0x35c   :  { %v848_v27 = vmul.f32 0.125, %v847_v25 }
 0x35d   :  { %v844_v46 = vmax.f32 %v824_v36, 0.0 }
 0x362   :  { %v826_v30 = vpop.f32.mrf.mxu3 }
 0x363   :  { %v827_v34 = vadd.f32 %v1524_v32, %v826_v30 }
 0x365   :  { %v845_v43 = vmax.f32 %v827_v34, 0.0 }
 0x36a   :  { %v828_v33 = vpop.f32.mrf.mxu3 }
 0x36b   :  { %v829_v35 = vadd.f32 %v1524_v32, %v828_v33 }
 0x36d   :  { %v846_v37 = vmax.f32 %v829_v35, 0.0 }
 0x36f   :  { %849 = vmatpush.msrb.mxu0 %v846_v37 }
 0x371   :  { %850 = vmatpush.msrb.mxu0 %v845_v43 }
 0x373   :  { %851 = vmatpush.msrb.mxu0 %v844_v46 }
 0x375   :  { %852 = vmatpush.msrb.mxu0 %v843_v50 }
 0x377   :  { %853 = vmatpush.msrb.mxu0 %v842_v53 }
 0x379   :  { %854 = vmatpush.msrb.mxu0 %v841_v58 }
 0x37b   :  { %855 = vmatpush.msrb.mxu0 %v840_v61 }
 0x37d   :  { %856 = vmatpush.msrb.mxu0 %v839_v0 }
 0x37f   :  { %857 = vmatpush.msrb.mxu0 %v838_v3 }
 0x381   :  { %858 = vmatpush.msrb.mxu0 %v837_v7 }
 0x383   :  { %859 = vmatpush.msrb.mxu0 %v836_v16 }
 0x385   :  { %860 = vmatpush.msrb.mxu0 %v835_v19 }
 0x387   :  { %861 = vmatpush.msrb.mxu0 %v834_v21 }
 0x389   :  { %862 = vmatpush.msrb.mxu0 %v833_v24 }
 0x38b   :  { %863 = vmatpush.msrb.mxu0 %v832_v26 }
 0x38d   :  { %864 = vmatpush.msrb.mxu0 %v831_v29 }
 0x38e   :  { %865 = vmatmul.f32.vlgmr.msrb.gmra.mxu0 %v848_v27 }
 0x40b   :  { %v866_v9 = vpop.f32.mrf.mxu0 }
 0x40c   :  { %918 = vmatmul.f32.vlgmr.msrb.gmra.mxu1 %v866_v9 }
 0x489   :  { %v919_v30 = vpop.f32.mrf.mxu1 }
 0x48a   :  { %v920_v31 = vadd.f32 %v919_v30, %v901_v8 }
 0x48c   :  { %922 = vst [vmem:[#allocation14] sm:$0x1] %v920_v31 }
 0x48d   :  { %933 = dma.vmem_to_hbm [thread:$0]  %s929_s10, 16, %s931_s13, [#allocation7]  }
 0x48e   :  { %1433 = dma.done.wait [#allocation7], 16  }
 0x48f   :  { %1434 = vsyncadd [#allocation7], 4294967280 }
 0x490   :  { %938 = vsyncpa [#allocation6], 1 }
 0x491   :  { %939 = vsyncpa [#allocation9], 1 }
 0x492   :  { %940 = vsyncpa [#allocation12], 1 }
 0x493   :  { %941 = vsyncpa [#allocation7], 1 }

</bundles_post_ra>
